<compile_context>
chip_gen: v5e
topology: v5e:2x2
jax: 0.10.0
libtpu: 0.0.40
codegen_flags: <defaults>
</compile_context>

<pallas_src>
import numpy as np
import jax
import jax.numpy as jnp
from jax.experimental import pallas as pl
from jax.experimental.pallas import tpu as pltpu

_BINS = (1, 2, 3, 6)


# ---------------------------------------------------------------------------
# Host-side construction of the separable pool + upsample operators
# (PyTorch AdaptiveAvgPool2d and bilinear interpolate, align_corners=False).
# ---------------------------------------------------------------------------
def _adaptive_pool_matrix(n_in: int, n_bins: int) -> np.ndarray:
    """P of shape (n_bins, n_in) s.t. pooled = P @ signal (PyTorch windows)."""
    P = np.zeros((n_bins, n_in), np.float32)
    for i in range(n_bins):
        s = (i * n_in) // n_bins
        e = -((-(i + 1) * n_in) // n_bins)  # ceil((i+1)*n_in / n_bins)
        P[i, s:e] = 1.0 / (e - s)
    return P


def _bilinear_src_index(n_out: int, n_in: int):
    """PyTorch bilinear (align_corners=False) source indices and weights."""
    o = np.arange(n_out, dtype=np.float64)
    src = np.maximum((o + 0.5) * (n_in / n_out) - 0.5, 0.0)
    i0 = np.minimum(np.floor(src).astype(np.int64), n_in - 1)
    i1 = np.minimum(i0 + 1, n_in - 1)
    frac = (src - i0).astype(np.float32)
    return i0, i1, frac


def _upsample_matrix(n_out: int, n_in: int) -> np.ndarray:
    """U of shape (n_out, n_in) s.t. upsampled = U @ signal."""
    i0, i1, f = _bilinear_src_index(n_out, n_in)
    U = np.zeros((n_out, n_in), np.float32)
    r = np.arange(n_out)
    U[r, i0] += 1.0 - f
    U[r, i1] += f
    return U


# ---------------------------------------------------------------------------
# Pallas kernel: one (batch, channel-tile, pyramid-level) block per grid step.
# ---------------------------------------------------------------------------
def _pyramid_level_kernel(x_ref, ah_ref, awt_ref, o_ref):
    # x_ref : (1, CT, H, W)   input channel-tile of one batch element
    # ah_ref: (1, H, H)       A_h for this level (unused for level 0)
    # awt_ref:(1, W, W)       A_w^T for this level (unused for level 0)
    # o_ref : (1, CT, H, W)   this level's output channel-tile
    lvl = pl.program_id(2)
    x = x_ref[0]                                   # (CT, H, W)
    ct, h, w = x.shape

    @pl.when(lvl == 0)
    def _():
        o_ref[0] = x                               # identity level: raw input

    @pl.when(lvl > 0)
    def _():
        awt = jnp.broadcast_to(awt_ref[0], (ct, w, w))   # (CT, W, W)
        ah = jnp.broadcast_to(ah_ref[0], (ct, h, h))     # (CT, H, H)
        # y[c, h, j] = sum_w x[c, h, w] * A_w[j, w]
        y = jnp.einsum('chw,cwj->chj', x, awt,
                       preferred_element_type=jnp.float32)
        # feat[c, i, j] = sum_h A_h[i, h] * y[c, h, j]
        feat = jnp.einsum('cih,chj->cij', ah, y,
                          preferred_element_type=jnp.float32)
        o_ref[0] = feat.astype(o_ref.dtype)


def _largest_divisor_at_most(n: int, cap: int) -> int:
    best = 1
    for d in range(1, n + 1):
        if n % d == 0 and d <= cap:
            best = d
    return best


def pyramid_pooling(x: jax.Array) -> jax.Array:
    """x: (B, C, H, W) float32 -> (B, 5*C, H, W), matching the PyTorch module."""
    B, C, H, W = x.shape
    L = len(_BINS) + 1                             # identity + 4 pyramid levels

    # Stack per-level operators; slot 0 (identity level) is never read.
    ah_all = np.zeros((L, H, H), np.float32)
    awt_all = np.zeros((L, W, W), np.float32)
    ah_all[0] = np.eye(H, dtype=np.float32)
    awt_all[0] = np.eye(W, dtype=np.float32)
    for k, nb in enumerate(_BINS, start=1):
        ah_all[k] = _upsample_matrix(H, nb) @ _adaptive_pool_matrix(H, nb)
        awt_all[k] = (_upsample_matrix(W, nb) @ _adaptive_pool_matrix(W, nb)).T
    ah_all = jnp.asarray(ah_all)
    awt_all = jnp.asarray(awt_all)

    # Channel tile: largest divisor of C whose (CT, H, W) f32 block stays within
    # ~2 MiB, so in/out double buffers stay at a few MiB even on v7x (64 MiB VMEM).
    max_ct = max(1, (2 << 20) // (H * W * 4))
    CT = _largest_divisor_at_most(C, max_ct)
    n_ct = C // CT

    out = pl.pallas_call(
        _pyramid_level_kernel,
        out_shape=jax.ShapeDtypeStruct((B * L, C, H, W), x.dtype),
        grid=(B, n_ct, L),                         # level innermost: x block reused
        in_specs=[
            pl.BlockSpec((1, CT, H, W), lambda b, c, k: (b, c, 0, 0)),
            pl.BlockSpec((1, H, H), lambda b, c, k: (k, 0, 0)),
            pl.BlockSpec((1, W, W), lambda b, c, k: (k, 0, 0)),
        ],
        out_specs=pl.BlockSpec((1, CT, H, W),
                               lambda b, c, k: (b * L + k, c, 0, 0)),
        compiler_params=pltpu.CompilerParams(
            dimension_semantics=("parallel", "parallel", "parallel")),
    )(x, ah_all, awt_all)

    # (B*L, C, H, W) -> (B, L*C, H, W): exactly torch.cat([x, f1, f2, f3, f6], 1)
    return out.reshape(B, L * C, H, W)


# ---------------------------------------------------------------------------
# Plain-JAX reference matching the PyTorch forward.
# ---------------------------------------------------------------------------
def _bilinear_upsample_ref(p: jax.Array, out_h: int, out_w: int) -> jax.Array:
    _, _, in_h, in_w = p.shape
    h0, h1, fh = _bilinear_src_index(out_h, in_h)
    w0, w1, fw = _bilinear_src_index(out_w, in_w)
    ph = (p[:, :, h0, :] * (1.0 - fh)[None, None, :, None]
          + p[:, :, h1, :] * fh[None, None, :, None])
    return (ph[:, :, :, w0] * (1.0 - fw)[None, None, None, :]
            + ph[:, :, :, w1] * fw[None, None, None, :])


def pyramid_pooling_ref(x: jax.Array) -> jax.Array:
    B, C, H, W = x.shape
    feats = [x]
    for nb in _BINS:
        rows = []
        for i in range(nb):
            hs, he = (i * H) // nb, -((-(i + 1) * H) // nb)
            cols = []
            for j in range(nb):
                ws, we = (j * W) // nb, -((-(j + 1) * W) // nb)
                cols.append(jnp.mean(x[:, :, hs:he, ws:we], axis=(2, 3)))
            rows.append(jnp.stack(cols, axis=-1))
        pooled = jnp.stack(rows, axis=-2)          # (B, C, nb, nb)
        feats.append(_bilinear_upsample_ref(pooled, H, W))
    return jnp.concatenate(feats, axis=1)


if __name__ == "__main__":
    B, C, H, W = 2, 4, 16, 16
    key = jax.random.PRNGKey(0)
    x = jax.random.normal(key, (B, C, H, W), dtype=jnp.float32)

    out = jax.block_until_ready(pyramid_pooling(x))
    ref = jax.block_until_ready(pyramid_pooling_ref(x))

    assert out.shape == (B, 5 * C, H, W), out.shape
    assert jnp.allclose(out, ref, atol=1e-3, rtol=1e-3), \
        float(jnp.max(jnp.abs(out - ref)))
    print("KERNEL_OK")
</pallas_src>

<mosaic_0001>
module attributes {stable_mosaic.version = 11 : i64} {
  func.func @_pyramid_level_kernel(%arg0: i32, %arg1: i32, %arg2: i32, %arg3: memref<1x4x16x16xf32, #tpu.memory_space<vmem>>, %arg4: memref<1x16x16xf32, #tpu.memory_space<vmem>>, %arg5: memref<1x16x16xf32, #tpu.memory_space<vmem>>, %arg6: memref<1x4x16x16xf32, #tpu.memory_space<vmem>>) attributes {dimension_semantics = [#tpu.dimension_semantics<parallel>, #tpu.dimension_semantics<parallel>, #tpu.dimension_semantics<parallel>], iteration_bounds = array<i64: 2, 1, 5>, scalar_prefetch = 0 : i64, scratch_operands = 0 : i64, tpu.core_type = #tpu.core_type<tc>, window_params = [{transform_indices = @transform_0, window_bounds = array<i64: 1, 4, 16, 16>}, {transform_indices = @transform_1, window_bounds = array<i64: 1, 16, 16>}, {transform_indices = @transform_2, window_bounds = array<i64: 1, 16, 16>}, {transform_indices = @transform_3, window_bounds = array<i64: 1, 4, 16, 16>}]} {
    %c0 = arith.constant 0 : index
    %c0_0 = arith.constant 0 : index
    %c0_1 = arith.constant 0 : index
    %c0_2 = arith.constant 0 : index
    %0 = vector.load %arg3[%c0, %c0_0, %c0_1, %c0_2] : memref<1x4x16x16xf32, #tpu.memory_space<vmem>>, vector<1x4x16x16xf32>
    %1 = vector.shape_cast %0 : vector<1x4x16x16xf32> to vector<4x16x16xf32>
    %c0_i32 = arith.constant 0 : i32
    %2 = arith.cmpi eq, %arg2, %c0_i32 : i32
    %3 = arith.extui %2 : i1 to i32
    %c0_i32_3 = arith.constant 0 : i32
    %4 = arith.cmpi ne, %3, %c0_i32_3 : i32
    scf.if %4 {
      %c0_6 = arith.constant 0 : index
      %c0_7 = arith.constant 0 : index
      %c0_8 = arith.constant 0 : index
      %c0_9 = arith.constant 0 : index
      %8 = vector.load %arg6[%c0_6, %c0_7, %c0_8, %c0_9] : memref<1x4x16x16xf32, #tpu.memory_space<vmem>>, vector<1x4x16x16xf32>
      %9 = vector.shape_cast %8 : vector<1x4x16x16xf32> to vector<4x16x16xf32>
      %10 = vector.shape_cast %1 : vector<4x16x16xf32> to vector<1x4x16x16xf32>
      tpu.vector_store %arg6[%c0_6, %c0_7, %c0_8, %c0_9], %10 {strides = array<i32>} : memref<1x4x16x16xf32, #tpu.memory_space<vmem>>, vector<1x4x16x16xf32>,
    } else {
    }
    %c0_i32_4 = arith.constant 0 : i32
    %5 = arith.cmpi sgt, %arg2, %c0_i32_4 : i32
    %6 = arith.extui %5 : i1 to i32
    %c0_i32_5 = arith.constant 0 : i32
    %7 = arith.cmpi ne, %6, %c0_i32_5 : i32
    scf.if %7 {
      %c0_6 = arith.constant 0 : index
      %c0_7 = arith.constant 0 : index
      %c0_8 = arith.constant 0 : index
      %8 = vector.load %arg5[%c0_6, %c0_7, %c0_8] : memref<1x16x16xf32, #tpu.memory_space<vmem>>, vector<1x16x16xf32>
      %9 = vector.shape_cast %8 : vector<1x16x16xf32> to vector<16x16xf32>
      %10 = vector.shape_cast %9 : vector<16x16xf32> to vector<1x16x16xf32>
      %11 = vector.broadcast %10 : vector<1x16x16xf32> to vector<4x16x16xf32>
      %c0_9 = arith.constant 0 : index
      %c0_10 = arith.constant 0 : index
      %c0_11 = arith.constant 0 : index
      %12 = vector.load %arg4[%c0_9, %c0_10, %c0_11] : memref<1x16x16xf32, #tpu.memory_space<vmem>>, vector<1x16x16xf32>
      %13 = vector.shape_cast %12 : vector<1x16x16xf32> to vector<16x16xf32>
      %14 = vector.shape_cast %13 : vector<16x16xf32> to vector<1x16x16xf32>
      %15 = vector.broadcast %14 : vector<1x16x16xf32> to vector<4x16x16xf32>
      "tpu.trace_start"() <{level = 10 : i32, message = "chw,cwj->chj"}> : () -> ()
      %cst = arith.constant dense<0.000000e+00> : vector<4x16x16xf32>
      %16 = tpu.matmul %1, %11, %cst {dimension_numbers = #tpu.dot_dimension_numbers<[2], [1], [1], [2], [0, 0, 0, 1, 1, 2], [0], [0]>} : vector<4x16x16xf32>, vector<4x16x16xf32>, vector<4x16x16xf32> -> vector<4x16x16xf32>
      "tpu.trace_stop"() : () -> ()
      "tpu.trace_start"() <{level = 10 : i32, message = "cih,chj->cij"}> : () -> ()
      %cst_12 = arith.constant dense<0.000000e+00> : vector<4x16x16xf32>
      %17 = tpu.matmul %15, %16, %cst_12 {dimension_numbers = #tpu.dot_dimension_numbers<[2], [1], [1], [2], [0, 0, 0, 1, 1, 2], [0], [0]>} : vector<4x16x16xf32>, vector<4x16x16xf32>, vector<4x16x16xf32> -> vector<4x16x16xf32>
      "tpu.trace_stop"() : () -> ()
      %c0_13 = arith.constant 0 : index
      %c0_14 = arith.constant 0 : index
      %c0_15 = arith.constant 0 : index
      %c0_16 = arith.constant 0 : index
      %18 = vector.load %arg6[%c0_13, %c0_14, %c0_15, %c0_16] : memref<1x4x16x16xf32, #tpu.memory_space<vmem>>, vector<1x4x16x16xf32>
      %19 = vector.shape_cast %18 : vector<1x4x16x16xf32> to vector<4x16x16xf32>
      %20 = vector.shape_cast %17 : vector<4x16x16xf32> to vector<1x4x16x16xf32>
      tpu.vector_store %arg6[%c0_13, %c0_14, %c0_15, %c0_16], %20 {strides = array<i32>} : memref<1x4x16x16xf32, #tpu.memory_space<vmem>>, vector<1x4x16x16xf32>,
    } else {
    }
    return
  }
  func.func @transform_0(%arg0: i32, %arg1: i32, %arg2: i32) -> (i32, i32, i32, i32) {
    %c0_i32 = arith.constant 0 : i32
    %c0_i32_0 = arith.constant 0 : i32
    %c0_i32_1 = arith.constant 0 : i32
    return %arg0, %arg1, %c0_i32, %c0_i32_0 : i32, i32, i32, i32
  }
  func.func @transform_1(%arg0: i32, %arg1: i32, %arg2: i32) -> (i32, i32, i32) {
    %c0_i32 = arith.constant 0 : i32
    %c0_i32_0 = arith.constant 0 : i32
    %c0_i32_1 = arith.constant 0 : i32
    return %arg2, %c0_i32, %c0_i32_0 : i32, i32, i32
  }
  func.func @transform_2(%arg0: i32, %arg1: i32, %arg2: i32) -> (i32, i32, i32) {
    %c0_i32 = arith.constant 0 : i32
    %c0_i32_0 = arith.constant 0 : i32
    %c0_i32_1 = arith.constant 0 : i32
    return %arg2, %c0_i32, %c0_i32_0 : i32, i32, i32
  }
  func.func @transform_3(%arg0: i32, %arg1: i32, %arg2: i32) -> (i32, i32, i32, i32) {
    %c5_i32 = arith.constant 5 : i32
    %0 = arith.muli %arg0, %c5_i32 : i32
    %1 = arith.addi %0, %arg2 : i32
    %c0_i32 = arith.constant 0 : i32
    %c0_i32_0 = arith.constant 0 : i32
    %c0_i32_1 = arith.constant 0 : i32
    return %1, %arg1, %c0_i32, %c0_i32_0 : i32, i32, i32, i32
  }
}

</mosaic_0001>

<bundles_post_ra>
// kernel: tpu_custom_call.1
= control target key start
LH: loop header
LB: loop body
LE: loop exit
PB: predicated region body
PF: predicated region fallthrough
CT: control target
= control target key end

     0   :  { %s1517_s0 = inlined_call_operand.hbm [shape: f32[2,4,16,16], index: 0, kind: input, shape index: {}]   ;;  %s1518_s1 = inlined_call_operand.hbm [shape: f32[5,16,16], index: 1, kind: input, shape index: {}]   ;;  %s1519_s2 = inlined_call_operand.hbm [shape: f32[5,16,16], index: 2, kind: input, shape index: {}]   ;;  %s1520_s3 = inlined_call_operand.hbm [shape: f32[10,4,16,16], index: 3, kind: output, shape index: {}]  }
   0x1   :  { %1540 = sst [smem:[#allocation25_spill]] %s1518_s1 }
   0x2   :  { %1541 = sst [smem:[#allocation26_spill]] %s1519_s2 }
   0x3   :  { %1542 = sst [smem:[#allocation27_spill]] %s1520_s3 }
   0x4   :  { %8 = vsyncpa [#allocation3], 0 }
   0x5   :  { %10 = vsyncpa [#allocation3 + $0x1], 0 }
   0x6   :  { %11 = vsyncpa [#allocation6], 0 }
   0x7   :  { %13 = vsyncpa [#allocation6 + $0x1], 0 }
   0x8   :  { %14 = vsyncpa [#allocation4], 0 }
   0x9   :  { %16 = vsyncpa [#allocation4 + $0x1], 0  ;;  %s1168_s12 = smov 0   ;;  %s1170_s13 = smov 0  }
   0xa   :  { %s1172_s14 = smov 0   ;;  %s1174_s15 = smov 0  }
   0xb   :  { %s1176_s16 = smov 0   ;;  %s1178_s17 = smov 0  }
   0xc   :  { %s1180_s18 = smov 0   ;;  %s1182_s19 = smov 0  }
   0xd   :  { %s1184_s20 = smov 0   ;;  %s1186_s21 = smov 0  }
   0xe   :  { %s1188_s22 = smov 0   ;;  %s1190_s23 = smov 0  }
   0xf   :  { %s1192_s24 = smov 0   ;;  %s1194_s25 = smov 0  }
  0x10 LB: > { %1543 = sst [smem:[#allocation12_spill]] %s1090_s12  ;;  %s1237_s26 = sadd.s32 4294967295, %s1142_s25   ;;  %s1142_s25 = sphi %s1194_s25, %s22_s25   ;;  %s1138_s24 = sphi %s1192_s24, %s1597_s24   ;;  %s1134_s23 = sphi %s1190_s23, %s1596_s23   ;;  %s1130_s22 = sphi %s1188_s22, %s1595_s22   ;;  %s1126_s21 = sphi %s1186_s21, %s1588_s21   ;;  %s1122_s20 = sphi %s1184_s20, %s1594_s20   ;;  %s1118_s19 = sphi %s1182_s19, %s1593_s19   ;;  %s1114_s18 = sphi %s1180_s18, %s1592_s18   ;;  %s1110_s17 = sphi %s1178_s17, %s1587_s17   ;;  %s1106_s16 = sphi %s1176_s16, %s1586_s16   ;;  %s1102_s15 = sphi %s1174_s15, %s1585_s15   ;;  %s1098_s14 = sphi %s1172_s14, %s1591_s14   ;;  %s1094_s13 = sphi %s1170_s13, %s1590_s13   ;;  %s1090_s12 = sphi %s1168_s12, %s1584_s12  }
  0x11   : > { %1544 = sst [smem:[#allocation13_spill]] %s1094_s13  ;;  %s718_s27 = sadd.s32 4294967294, %s1142_s25  }
  0x12   : > { %1545 = sst [smem:[#allocation14_spill]] %s1106_s16  ;;  %s34_s28 = sadd.s32 1, %s1134_s23 }
  0x13   : > { %1546 = sst [smem:[#allocation15_spill]] %s1110_s17  ;;  %p58_p0 = scmp.eq.s32.totalorder %s1142_s25, 0 }
  0x14   : > { %1547 = sst [smem:[#allocation16_spill]] %s1126_s21  ;;  %p1242_p1 = scmp.ge.s32.totalorder %s34_s28, 5 }
  0x15   : > { %1548 = sst [smem:[#allocation17_spill]] %s1130_s22  ;;  %p64_p2 = scmp.eq.s32.totalorder %s1237_s26, 0 }
  0x16   : > { %1549 = sst [smem:[#allocation18_spill]] %s1134_s23  ;;  %s76_s30 = sadd.s32 1, %s1110_s17 }
  0x17   : > { %1550 = sst [smem:[#allocation19_spill]] %s1237_s26  ;;  %p83_p3 = scmp.ne.s32.totalorder %s1110_s17, %s1106_s16 }
  0x18   : > { %s1599_s28 = smov (%p1242_p1, %s34_s28), 0  ;;  %p89_p5 = scmp.ne.s32.totalorder %s1106_s16, %s1102_s15 }
  0x19   : > { %p1256_p4 = por %p83_p3, %p58_p0  ;;  %s73_s5 = ssub.s32 %s1134_s23, %s1599_s28 }
  0x1a   : > { %p144_p6 = scmp.ne.s32.totalorder %s1098_s14, %s1094_s13  ;;  %p74_p7 = scmp.eq.s32.totalorder %s73_s5, 0 }
  0x1b   : > { %p1267_p8 = por %p89_p5, %p64_p2  ;;  %p145_p9 = scmp.eq.s32.totalorder %s1237_s26, 9 }
  0x1c   : > { %p150_p10 = scmp.ne.s32.totalorder %s1094_s13, %s1090_s12  ;;  %p151_p12 = scmp.eq.s32.totalorder %s718_s27, 9 }
  0x1d   : > { %s1553_s6 = scalar_select %p1267_p8, 1, 0 }
  0x1e   : > { %s1275_s7 = scalar_select %p74_p7, %s1110_s17, %s76_s30  }
  0x1f   : > { %1554 = sst [smem:[#allocation20_spill]] %s1553_s6  ;;  %p1277_p11 = por %p145_p9, %p144_p6 }
  0x20   : > { %1555 = sst [smem:[#allocation21_spill]] %s1275_s7  ;;  %p1525_p13 = scmp.lt.s32.totalorder %s1142_s25, 10 }
  0x21   : > { %s1556_s8 = scalar_select %p1277_p11, 1, 0 }
  0x22   : > { %p1282_p3 = por %p151_p12, %p150_p10  ;;  %s196_s10 = sand.u32 1, %s1142_s25  }
  0x23   : > { %1557 = sst [smem:[#allocation22_spill]] %s1556_s8  ;;  %s198_s11 = sand.u32 1, %s1110_s17  }
  0x24   : > { %s1558_s9 = scalar_select %p1282_p3, 1, 0 }
  0x25   : > { %s724_s15 = sshll.u32 %s198_s11, 4  ;;  %s759_s5 = sshll.u32 %s1134_s23, 4 }
  0x26   : > { %1559 = sst [smem:[#allocation23_spill]] %s1558_s9  ;;  %s200_s7 = scalar_lea.vmem [#allocation5], %s724_s15 }
  0x27   : > { %s1560_s1 = sld [smem:[#allocation25_spill]]  ;;  %s208_s21 = sshll.u32 %s200_s7, 4  ;;  %s209_s21 = int_to_ptr.vmem [resolvable:$true] %s208_s21 }
  0x28   : > { %p1296_p5 = pnand %p1525_p13, %p1256_p4  ;;  %s1562_s2 = sld [smem:[#allocation26_spill]] }
  0x29   : > { %s222_s12 = scalar_lea.vmem [#allocation7], %s724_s15  ;;  %s1305_s7 = scalar_lea.sflag [#allocation6], %s196_s10 }
  0x2a   : > { %s1528_s9 = smov 8   ;;  %p730_p4 = scmp.ge.s32.totalorder %s1142_s25, 1 }
  0x2b   : > { %p238_p6 = scmp.lt.s32.totalorder %s1142_s25, 11  ;;  %s41_s10 = sadd.s32 1, %s1138_s24 }
  0x2c   : > { %s1601_s10 = smov (!%p1242_p1, %s41_s10), %s1138_s24  ;;  %s50_s15 = sadd.s32 1, %s1122_s20 }
  0x2d   : > { %s205_s22 = scalar_lea.hbm %s1560_s1, %s759_s5  ;;  %s1526_s1 = smov 128  }
  0x2e   : > { %s206_s30 = sshll.u32 %s205_s22, 4  ;;  %s227_s3 = scalar_lea.hbm %s1562_s2, %s759_s5  ;;  %s207_s30 = int_to_ptr.hbm [resolvable:$true] %s206_s30 }
  0x2f   : > { %s1303_s22 = sshll.u32 %s222_s12, 4  ;;  %s228_s4 = sshll.u32 %s227_s3, 4  ;;  %s1313_s4 = int_to_ptr.hbm [resolvable:$true] %s228_s4  ;;  %s231_s22 = int_to_ptr.vmem [resolvable:$true] %s1303_s22 }
  0x30   : > { %776 = dma.hbm_to_vmem [thread:$0]  (!%p1296_p5), %s207_s30, 256, %s209_s21, %s1305_s7, %s1526_s1, %s1526_s1, %s1528_s9  }
  0x31   : > { %p1318_p7 = pnand %p730_p4, %p238_p6  ;;  %p57_p9 = scmp.ne.s32.totalorder %s1122_s20, %s1118_s19 }
  0x32   : > { %p43_p10 = scmp.ge.s32.totalorder %s1601_s10, 2  ;;  %p63_p12 = scmp.ne.s32.totalorder %s1118_s19, %s1114_s18 }
  0x33   : > { %p1333_p13 = por %p58_p0, %p57_p9  ;;  %s125_s5 = smul.u32 5, %s1138_s24 }
  0x34   : > { %s1603_s10 = smov (%p43_p10, %s1601_s10), 0  ;;  %p1342_p4 = por %p64_p2, %p63_p12 }
  0x35   : > { %1565 = sst [smem:[#allocation24_spill]] %s1603_s10  ;;  %s126_s30 = sadd.s32 %s1134_s23, %s125_s5 }
  0x36   : > { %s45_s11 = ssub.s32 %s1138_s24, %s1603_s10  ;;  %s127_s18 = smul.u32 5, %s1603_s10 }
  0x37   : > { %p48_p1 = scmp.eq.s32.totalorder %s45_s11, 0  ;;  %s134_s3 = sadd.s32 1, %s1098_s14 }
  0x38   : > { %s128_s12 = sadd.s32 %s127_s18, %s1599_s28  ;;  %s171_s1 = sand.u32 1, %s1122_s20  }
  0x39   : > { %s1354_s9 = scalar_select %p48_p1, %s1122_s20, %s50_s15  }
  0x3a   : > { %s129_s2 = ssub.s32 %s126_s30, %s128_s12  ;;  %s721_s8 = sshll.u32 %s171_s1, 6 }
  0x3b   : > { %p132_p0 = scmp.eq.s32.totalorder %s129_s2, 0  ;;  %s758_s13 = sshll.u32 %s1138_s24, 6 }
  0x3c   : > { %s183_s11 = scalar_lea.hbm %s1517_s0, %s758_s13  ;;  %s175_s23 = scalar_lea.vmem [#allocation2], %s721_s8 }
  0x3d   : > { %s1358_s6 = scalar_select %p132_p0, %s1098_s14, %s134_s3  }
  0x3e   : > { %s186_s16 = sshll.u32 %s175_s23, 4  ;;  %s184_s26 = sshll.u32 %s183_s11, 4  ;;  %s187_s16 = int_to_ptr.vmem [resolvable:$true] %s186_s16  ;;  %s185_s26 = int_to_ptr.hbm [resolvable:$true] %s184_s26 }
  0x3f   : > { %p1567_p2 = scmp.lt.s32.totalorder %s1142_s25, 10  ;;  %s1568_s15 = smov 8  }
  0x40   : > { %s1569_s30 = smov 128   ;;  %s172_s2 = scalar_lea.sflag [#allocation3], %s171_s1 }
  0x41   : > { %p771_p6 = pnand %p1567_p2, %p1333_p13  ;;  %242 = sbr.rel (%p1318_p7) target bundleno = 433 (0x1b1), region = 32 }
  0x42   : > { %779 = dma.hbm_to_vmem [thread:$0]  (!%p1296_p5), %s1313_s4, 256, %s231_s22, %s1305_s7, %s1569_s30, %s1569_s30, %s1568_s15  }
  0x43   : > { %773 = dma.hbm_to_vmem [thread:$0]  (!%p771_p6), %s185_s26, 1024, %s187_s16, %s172_s2, %s1569_s30, %s1569_s30, %s1568_s15  }
  0x44   : > { %s244_s13 = sand.u32 (!%p1318_p7), 1, %s1118_s19  }
  0x45   : > { %s731_s23 = sshll.u32 (!%p1318_p7), %s244_s13, 6  ;;  %s245_s8 = scalar_lea.sflag (!%p1318_p7), [#allocation3], %s244_s13 }
  0x46   : > { %s248_s10 = scalar_lea.vmem [#allocation2], %s731_s23 }
  0x47   : > { %1077 = dma.done.wait (%p1342_p4), %s245_s8, 1024  }
  0x48   : > { %1079 = vsyncadd (%p1342_p4), %s245_s8, 4294966272  ;;  %s1570_s27 = sld [smem:[#allocation19_spill]] }
  0x49   : > { %s1571_s1 = sld [smem:[#allocation14_spill]] }
  0x4e   : > { %s254_s4 = sand.u32 1, %s1570_s27  }
  0x4f   : > { %s256_s7 = sand.u32 1, %s1571_s1   ;;  %s255_s26 = scalar_lea.sflag [#allocation6], %s254_s4 }
  0x50   : > { %s1388_s16 = sshll.u32 %s256_s7, 4 }
  0x51   : > { %s258_s17 = scalar_lea.vmem [#allocation5], %s1388_s16 }
  0x52   : > { %1081 = dma.done.wait (%p1267_p8), %s255_s26, 512  }
  0x53   : > { %1083 = vsyncadd (%p1267_p8), %s255_s26, 4294966784  ;;  %s1573_s21 = sld [smem:[#allocation13_spill]]  ;;  %v306_v0 = vld [vmem:[%s248_s10] sm:$0xff]  ;;  %v307_v1 = vld [vmem:[%s248_s10 + $0x8] sm:$0xff]  ;;  %s268_s3 = scalar_lea.vmem [#allocation7], %s1388_s16 }
  0x54   : > { %v308_v2 = vld [vmem:[%s248_s10 + $0x10] sm:$0xff]  ;;  %v309_v3 = vld [vmem:[%s248_s10 + $0x18] sm:$0xff]  ;;  %v310_v4 = vld [vmem:[%s248_s10 + $0x20] sm:$0xff]  ;;  %s1574_s5 = sld [smem:[#allocation16_spill]] }
  0x55   : > { %v311_v5 = vld [vmem:[%s248_s10 + $0x28] sm:$0xff]  ;;  %v312_v6 = vld [vmem:[%s248_s10 + $0x30] sm:$0xff]  ;;  %v313_v7 = vld [vmem:[%s248_s10 + $0x38] sm:$0xff] }
  0x59   : > { %s299_s29 = sand.u32 1, %s1573_s21  }
  0x5a   : > { %s734_s18 = sshll.u32 %s299_s29, 6  ;;  %p735_p13 = scmp.ne.s32.totalorder %s1574_s5, 0 }
  0x5b   : > { %s1399_s12 = scalar_lea.vmem [#allocation8], %s734_s18 }
  0x5c   : > { %317 = sbr.rel (%p735_p13) target bundleno = 106 (0x6a), region = 48 }
  0x61   : > { %vm318_vm0 = vcmask 130048  }
  0x62   : > { %319 = vst.msk [vmem:[%s1399_s12] sm:$0xff] %vm318_vm0, %v306_v0 }
  0x63   : > { %320 = vst.msk [vmem:[%s1399_s12 + $0x8] sm:$0xff] %vm318_vm0, %v307_v1 }
  0x64   : > { %321 = vst.msk [vmem:[%s1399_s12 + $0x10] sm:$0xff] %vm318_vm0, %v308_v2 }
  0x65   : > { %322 = vst.msk [vmem:[%s1399_s12 + $0x18] sm:$0xff] %vm318_vm0, %v309_v3 }
  0x66   : > { %323 = vst.msk [vmem:[%s1399_s12 + $0x20] sm:$0xff] %vm318_vm0, %v310_v4 }
  0x67   : > { %324 = vst.msk [vmem:[%s1399_s12 + $0x28] sm:$0xff] %vm318_vm0, %v311_v5 }
  0x68   : > { %325 = vst.msk [vmem:[%s1399_s12 + $0x30] sm:$0xff] %vm318_vm0, %v312_v6 }
  0x69   : > { %326 = vst.msk [vmem:[%s1399_s12 + $0x38] sm:$0xff] %vm318_vm0, %v313_v7 }
  0x6a PF: > { %s1575_s11 = sld [smem:[#allocation16_spill]] }
  0x70   : > { %p736_p8 = scmp.le.s32.totalorder %s1575_s11, 0 }
  0x72   : > { %330 = sbr.rel (%p736_p8) target bundleno = 408 (0x198), region = 52 }
  0x77   : > { %v332_v8 = vld [vmem:[%s268_s3 + $0x8] sm:$0xff]  ;;  %v331_v9 = vld [vmem:[%s268_s3] sm:$0xff]  ;;  %vm335_vm1 = vcmask 130048  }
  0x78   : > { %414 = vmatpush.msra.mxu2 %v332_v8  ;;  %443 = vmatpush.msra.mxu3 %v332_v8  ;;  %v333_v16 = vld [vmem:[%s258_s17] sm:$0xff]  ;;  %v334_v19 = vld [vmem:[%s258_s17 + $0x8] sm:$0xff] }
  0x79   : > { %356 = vmatpush.msra.mxu0 %v332_v8  ;;  %385 = vmatpush.msra.mxu1 %v332_v8 }
  0x7a   : > { %415 = vmatpush.msra.mxu2 %v331_v9  ;;  %444 = vmatpush.msra.mxu3 %v331_v9 }
  0x7b   : > { %741 = vmatmul.msk.f32.vlgmr.msra.gmra.mxu2 %vm335_vm1, %v310_v4  ;;  %743 = vmatmul.msk.f32.vlgmr.msra.gmra.mxu3 %vm335_vm1, %v312_v6 }
  0x7c   : > { %357 = vmatpush.msra.mxu0 %v331_v9  ;;  %386 = vmatpush.msra.mxu1 %v331_v9 }
  0x7d   : > { %737 = vmatmul.msk.f32.vlgmr.msra.gmra.mxu0 %vm335_vm1, %v306_v0  ;;  %739 = vmatmul.msk.f32.vlgmr.msra.gmra.mxu1 %vm335_vm1, %v308_v2 }
  0x83   : > { %742 = vmatmul.msk.f32.gmra.mxu2 %vm335_vm1, %v311_v5  ;;  %744 = vmatmul.msk.f32.gmra.mxu3 %vm335_vm1, %v313_v7 }
  0x85   : > { %738 = vmatmul.msk.f32.gmra.mxu0 %vm335_vm1, %v307_v1  ;;  %740 = vmatmul.msk.f32.gmra.mxu1 %vm335_vm1, %v309_v3 }
  0xfa   : > { %v359_v10 = vpop.f32.mrf.mxu0  ;;  %v388_v11 = vpop.f32.mrf.mxu1 }
  0xfe   : > { %v417_v12 = vpop.f32.mrf.mxu2  ;;  %v446_v13 = vpop.f32.mrf.mxu3 }
 0x102   : > { %v362_v14 = vpop.f32.mrf.mxu0  ;;  %v391_v15 = vpop.f32.mrf.mxu1 }
 0x103   : > { %472 = vmatpush.msrb.mxu0 %v362_v14  ;;  %495 = vmatpush.msrb.mxu1 %v391_v15 }
 0x105   : > { %473 = vmatpush.msrb.mxu0 %v359_v10  ;;  %496 = vmatpush.msrb.mxu1 %v388_v11 }
 0x106   : > { %v420_v17 = vpop.f32.mrf.mxu2  ;;  %v449_v18 = vpop.f32.mrf.mxu3  ;;  %745 = vmatmul.msk.f32.vlgmr.msrb.gmra.mxu0 %vm335_vm1, %v333_v16  ;;  %747 = vmatmul.msk.f32.vlgmr.msrb.gmra.mxu1 %vm335_vm1, %v333_v16 }
 0x107   : > { %518 = vmatpush.msrb.mxu2 %v420_v17  ;;  %541 = vmatpush.msrb.mxu3 %v449_v18 }
 0x109   : > { %519 = vmatpush.msrb.mxu2 %v417_v12  ;;  %542 = vmatpush.msrb.mxu3 %v446_v13 }
 0x10a   : > { %749 = vmatmul.msk.f32.vlgmr.msrb.gmra.mxu2 %vm335_vm1, %v333_v16  ;;  %751 = vmatmul.msk.f32.vlgmr.msrb.gmra.mxu3 %vm335_vm1, %v333_v16 }
 0x10e   : > { %746 = vmatmul.msk.f32.gmra.mxu0 %vm335_vm1, %v334_v19  ;;  %748 = vmatmul.msk.f32.gmra.mxu1 %vm335_vm1, %v334_v19 }
 0x112   : > { %750 = vmatmul.msk.f32.gmra.mxu2 %vm335_vm1, %v334_v19  ;;  %752 = vmatmul.msk.f32.gmra.mxu3 %vm335_vm1, %v334_v19 }
 0x183   : > { %v475_v20 = vpop.f32.mrf.mxu0  ;;  %v498_v21 = vpop.f32.mrf.mxu1 }
 0x184   : > { %550 = vst.msk [vmem:[%s1399_s12] sm:$0xff] %vm335_vm1, %v475_v20 }
 0x185   : > { %552 = vst.msk [vmem:[%s1399_s12 + $0x10] sm:$0xff] %vm335_vm1, %v498_v21 }
 0x18b   : > { %v478_v22 = vpop.f32.mrf.mxu0  ;;  %v501_v23 = vpop.f32.mrf.mxu1 }
 0x18c   : > { %551 = vst.msk [vmem:[%s1399_s12 + $0x8] sm:$0xff] %vm335_vm1, %v478_v22 }
 0x18d   : > { %v521_v24 = vpop.f32.mrf.mxu2  ;;  %v544_v25 = vpop.f32.mrf.mxu3  ;;  %553 = vst.msk [vmem:[%s1399_s12 + $0x18] sm:$0xff] %vm335_vm1, %v501_v23 }
 0x18e   : > { %554 = vst.msk [vmem:[%s1399_s12 + $0x20] sm:$0xff] %vm335_vm1, %v521_v24 }
 0x18f   : > { %556 = vst.msk [vmem:[%s1399_s12 + $0x30] sm:$0xff] %vm335_vm1, %v544_v25 }
 0x195   : > { %v524_v26 = vpop.f32.mrf.mxu2  ;;  %v547_v27 = vpop.f32.mrf.mxu3 }
 0x196   : > { %555 = vst.msk [vmem:[%s1399_s12 + $0x28] sm:$0xff] %vm335_vm1, %v524_v26 }
 0x197   : > { %557 = vst.msk [vmem:[%s1399_s12 + $0x38] sm:$0xff] %vm335_vm1, %v547_v27 }
 0x198 PF: > { %s1576_s15 = sld [smem:[#allocation17_spill]]  ;;  %s576_s8 = sshll.u32 %s1399_s12, 4  ;;  %s577_s8 = int_to_ptr.vmem [resolvable:$true] %s576_s8 }
 0x199   : > { %s1577_s30 = sld [smem:[#allocation16_spill]]  ;;  %s559_s26 = scalar_lea.sflag [#allocation4], %s299_s29 }
 0x19a   : > { %s1580_s4 = sld [smem:[#allocation27_spill]] }
 0x19e   : > { %s566_s23 = smul.u32 5, %s1576_s15 }
 0x1a0   : > { %s567_s10 = sadd.s32 %s1577_s30, %s566_s23  ;;  %s1012_s12 = scalar_lea.hbm %s1580_s4, 640 }
 0x1a1   : > { %s761_s27 = sshll.u32 %s567_s10, 6 }
 0x1a2   : > { %s575_s7 = scalar_lea.hbm %s1580_s4, %s761_s27 }
 0x1a3   : > { %s578_s16 = sshll.u32 %s575_s7, 4  ;;  %s579_s16 = int_to_ptr.hbm [resolvable:$true] %s578_s16 }
 0x1a4   : > { %s1006_s17 = sshra.s32 %s579_s16, 4  ;;  %s1007_s17 = int_to_ptr.hbm [resolvable:$true] %s1006_s17 }
 0x1a5   : > { %s1008_s21 = scalar_lea.hbm %s1007_s17, 64  ;;  %p1013_p10 = scmp.lt.s32.totalorder %s1007_s17, %s1580_s4 }
 0x1a6   : > { %p1009_p5 = scmp.ne.s32.totalorder %s1007_s17, %s1008_s21  ;;  %p1014_p12 = scmp.lt.s32.totalorder %s1012_s12, %s1008_s21 }
 0x1a8   : > { %p1010_p7 = pnand %p1009_p5, %p1277_p11  ;;  %p1015_p4 = por %p1014_p12, %p1013_p10 }
 0x1aa   : > { %p1011_p9 = pneg %p1010_p7 }
 0x1ac   : > { %p1016_p1 = pnand %p1015_p4, %p1011_p9 }
 0x1ae   : > { %1019 = shalt.err (!%p1016_p1)
}
 0x1af   : > { %s1146_s29 = smov 128   ;;  %s1147_s15 = smov 8  }
 0x1b0   : > { %768 = dma.vmem_to_hbm [thread:$0]  (%p1277_p11), %s577_s8, 1024, %s579_s16, %s559_s26, %s1146_s29, %s1146_s29, %s1147_s15  }
 0x1b1 PF: > { %s1581_s30 = sld [smem:[#allocation12_spill]]  ;;  %p785_p0 = scmp.ge.s32.totalorder %s1142_s25, 2 }
 0x1b3   : > { %p781_p2 = pnand %p785_p0, %p1282_p3 }
 0x1b5   : > { %p782_p6 = pneg %p781_p2 }
 0x1b7   : > { %s593_s23 = sand.u32 1, %s1581_s30  }
 0x1b8   : > { %s594_s10 = scalar_lea.sflag [#allocation4], %s593_s23 }
 0x1b9   : > { %1085 = dma.done.wait (%p782_p6), %s594_s10, 1024  }
 0x1ba   : > { %1087 = vsyncadd (%p782_p6), %s594_s10, 4294966272  ;;  %s22_s25 = sadd.s32 1, %s1142_s25   ;;  %s1584_s12 = sld [smem:[#allocation13_spill]] }
 0x1bb   : > { %p1470_p13 = scmp.ge.s32.totalorder %s22_s25, 12   ;;  %s1585_s15 = sld [smem:[#allocation14_spill]] }
 0x1bc   : > { %s1586_s16 = sld [smem:[#allocation15_spill]]  ;;  %s1590_s13 = smov %s1098_s14 }
 0x1bd   : > { %s1587_s17 = sld [smem:[#allocation21_spill]]  ;;  %s1591_s14 = smov %s1358_s6 }
 0x1be   : > { %s1588_s21 = sld [smem:[#allocation18_spill]]  ;;  %s1592_s18 = smov %s1118_s19 }
 0x1bf   : > { %s1589_s8 = sld [smem:[#allocation24_spill]]  ;;  %s1593_s19 = smov %s1122_s20 }
 0x1c0   : > { %s1594_s20 = smov %s1354_s9  ;;  %s1595_s22 = smov %s1138_s24 }
 0x1c1   : > { %s1596_s23 = smov %s1599_s28  ;;  %21 = sbr.rel (!%p1470_p13) target bundleno = 16 (0x10), region = 109 }
 0x1c5   : > { %s1597_s24 = smov %s1589_s8 }
 0x1c6   :  { %600 = vsyncpa [#allocation3], 1 }
 0x1c7   :  { %602 = vsyncpa [#allocation3 + $0x1], 1 }
 0x1c8   :  { %603 = vsyncpa [#allocation6], 1 }
 0x1c9   :  { %605 = vsyncpa [#allocation6 + $0x1], 1 }
 0x1ca   :  { %606 = vsyncpa [#allocation4], 1 }
 0x1cb   :  { %608 = vsyncpa [#allocation4 + $0x1], 1 }

</bundles_post_ra>
